<compile_context>
chip_gen: v7x
topology: tpu7x:2x2x1
jax: 0.10.0
libtpu: 0.0.40
codegen_flags: <defaults>
</compile_context>

<pallas_src>
import functools
import math

import jax
import jax.numpy as jnp
import numpy as np
from jax.experimental import pallas as pl
from jax.experimental.pallas import tpu as pltpu


def _round_up(v, m):
    return ((v + m - 1) // m) * m


def _conv_bn_silu_kernel(x_ref, w_ref, b_ref, o_ref, *, tm, k):
    """Fused conv (k banded row-matmuls) + folded-BN bias + SiLU.

    x_ref: (R_in, Kp)     f32  zero-padded, batch-concatenated image rows
    w_ref: (k, Kp, WC2p)  bf16 per-kernel-row block-banded weights (BN scale folded in)
    b_ref: (1, WC2p)      f32  folded BN bias, tiled across W (lane-dense)
    o_ref: (tm, WC2p)     f32  output row-block (lane-dense, unmasked full-tile stores)
    """
    rb = pl.program_id(0)
    row0 = pl.multiple_of(rb * tm, 8)            # tm is a multiple of 8

    # k shifted row-window matmuls.  x slices are cast to bf16 in-registers so the MXU
    # runs native bf16 x bf16 -> f32; K = Kp is a multiple of 128 (full-lane loads).
    # Kept as a += chain: near-free on v7x (MRB in-place accumulate), hidden under MXU
    # time on v5e/v6e.
    acc = jnp.dot(x_ref[pl.ds(row0, tm), :].astype(jnp.bfloat16), w_ref[0],
                  preferred_element_type=jnp.float32)
    for kh in range(1, k):
        acc += jnp.dot(x_ref[pl.ds(row0 + kh, tm), :].astype(jnp.bfloat16), w_ref[kh],
                       preferred_element_type=jnp.float32)

    y = acc + b_ref[...]                          # f32 epilogue
    # SiLU: y * sigmoid(y)  (sigmoid -> EUP slot, mul -> VPU, single full-lane store)
    o_ref[...] = (y * jax.nn.sigmoid(y)).astype(o_ref.dtype)


def conv_bn_silu(x, weight, gamma, beta, running_mean, running_var,
                 *, k=3, eps=1e-5, tile_m=None):
    """x: (N, C1, H, W) NCHW, weight: (C2, C1, k, k).  Returns (N, C2, H, W).

    Implements Conv(c1, c2, k, s=1, p=autopad, g=1, d=1, act=SiLU) in eval mode
    (BatchNorm folded from running statistics).
    """
    n, c1, h, w_ = x.shape
    c2 = weight.shape[0]
    pad = k // 2                                  # autopad for odd k, s=1, d=1
    wp = w_ + 2 * pad
    hp_seg = h + 2 * pad                          # per-batch-element padded row count
    x_it = jnp.dtype(x.dtype).itemsize

    # ---- lane-dense output: pad C2 so W*C2p is a multiple of 128 ----
    lane_mult = 128 // math.gcd(w_, 128)
    c2p = _round_up(max(c2, 1), lane_mult)
    wc2p = w_ * c2p

    # ---- aligned contraction dim: pad (W+2p)*C1 up to a multiple of 128 ----
    kdim = wp * c1
    kpad = _round_up(kdim, 128)

    # ---- fold eval-mode BN into conv weight + bias (in f32) ----
    scale = gamma / jnp.sqrt(running_var + eps)                # (C2,)
    bias = beta - running_mean * scale                         # (C2,)
    w_folded = weight * scale[:, None, None, None]             # (C2, C1, k, k)
    w_folded = jnp.pad(w_folded, ((0, c2p - c2), (0, 0), (0, 0), (0, 0)))
    bias_p = jnp.pad(bias, (0, c2p - c2))

    # ---- per-kernel-row block-banded weights (kw shifts folded into the GEMM), bf16 ----
    wt = jnp.transpose(w_folded, (2, 3, 1, 0))                 # (kh, kw, C1, C2p)
    shifts = jnp.stack([jnp.eye(wp, w_, -kw, dtype=wt.dtype) for kw in range(k)])
    # w_rows[kh, (b+kw)*C1 + i, b*C2p + j] = wt[kh, kw, i, j]
    w_rows = jnp.einsum('wab,hwij->haibj', shifts, wt).reshape(k, kdim, wc2p)
    w_rows = jnp.pad(w_rows, ((0, 0), (0, kpad - kdim), (0, 0))).astype(jnp.bfloat16)
    b_row = jnp.tile(bias_p, w_).reshape(1, wc2p)              # f32, lane-dense

    # ---- batch folded into the row (M) axis; each segment keeps its own zero halos ----
    rows = n * hp_seg
    if tile_m is None:
        # target M=256, but split into >= 2 balanced blocks so both v7x TCs get work
        tile_m = min(256, _round_up(pl.cdiv(rows, 2), 8))
    tile_m = max(8, (int(tile_m) // 8) * 8)
    while tile_m > 8 and 2 * tile_m * wc2p * x_it > (8 << 20):  # cap out double-buffer
        tile_m = max(8, ((tile_m // 2) // 8) * 8)
    num_rb = pl.cdiv(rows, tile_m)
    r_out = num_rb * tile_m                       # exact multiple: no masked stores
    r_in = _round_up(r_out + 2 * pad, 8)

    x_nhwc = jnp.transpose(x, (0, 2, 3, 1))                    # (N, H, W, C1)
    x_wpad = jnp.pad(x_nhwc, ((0, 0), (0, 0), (pad, pad), (0, 0)))
    x_rows = x_wpad.reshape(n, h, kdim)
    x_rows = jnp.pad(x_rows, ((0, 0), (pad, pad), (0, kpad - kdim)))  # (N, HPseg, Kp)
    x_cat = x_rows.reshape(rows, kpad)
    x_cat = jnp.pad(x_cat, ((0, r_in - rows), (0, 0)))         # f32 (see header note)

    kernel = functools.partial(_conv_bn_silu_kernel, tm=tile_m, k=k)

    # ---- advisory cost: FLOPs actually executed by the banded (padded) GEMMs ----
    bytes_acc = (x_cat.size * x_it + w_rows.size * 2 + b_row.size * 4
                 + r_out * wc2p * x_it)
    cost = pl.CostEstimate(flops=2 * r_out * kpad * wc2p * k,
                           transcendentals=r_out * wc2p,
                           bytes_accessed=bytes_acc)

    # ---- explicit VMEM budget from the real residency (x2: default double buffers) ----
    resident = 2 * (x_cat.size * x_it + w_rows.size * 2 + b_row.size * 4
                    + tile_m * wc2p * x_it)
    vmem_limit = int(min(64 << 20, max(8 << 20, 2 * resident)))   # stay within v7x VMEM

    out_flat = pl.pallas_call(
        kernel,
        out_shape=jax.ShapeDtypeStruct((r_out, wc2p), x.dtype),
        grid_spec=pltpu.PrefetchScalarGridSpec(
            num_scalar_prefetch=0,
            grid=(num_rb,),
            in_specs=[
                # grid-invariant blocks (constant index maps): DMA'd once, kept resident
                pl.BlockSpec((r_in, kpad), lambda rb: (0, 0)),
                pl.BlockSpec((k, kpad, wc2p), lambda rb: (0, 0, 0)),
                pl.BlockSpec((1, wc2p), lambda rb: (0, 0)),
            ],
            out_specs=pl.BlockSpec((tile_m, wc2p), lambda rb: (rb, 0)),
        ),
        compiler_params=pltpu.CompilerParams(
            dimension_semantics=("parallel",),
            vmem_limit_bytes=vmem_limit),
        cost_estimate=cost,
    )(x_cat, w_rows, b_row)

    # Drop per-segment halo rows, padded tail rows and padded channels; back to NCHW.
    out = out_flat[:rows].reshape(n, hp_seg, w_, c2p)[:, :h, :, :c2]
    return jnp.transpose(out, (0, 3, 1, 2))


def _reference(x, weight, gamma, beta, running_mean, running_var, *, k=3, eps=1e-5):
    """Pure-JAX reference: conv2d (same pad) + eval-mode BN + SiLU, NCHW."""
    y = jax.lax.conv_general_dilated(
        x, weight, window_strides=(1, 1), padding=[(k // 2, k // 2)] * 2,
        dimension_numbers=("NCHW", "OIHW", "NCHW"))
    scale = gamma / jnp.sqrt(running_var + eps)
    bias = beta - running_mean * scale
    y = y * scale[None, :, None, None] + bias[None, :, None, None]
    return y * jax.nn.sigmoid(y)


if __name__ == "__main__":
    # Conv(c1=4, c2=8, k=3, s=1) with default act=True (SiLU), eval-mode BN.
    key = jax.random.PRNGKey(0)
    k_x, k_w, k_g, k_b, k_m, k_v = jax.random.split(key, 6)

    N, C1, H, W = 2, 4, 16, 16
    C2, K = 8, 3

    x = jax.random.normal(k_x, (N, C1, H, W), dtype=jnp.float32)
    weight = jax.random.normal(k_w, (C2, C1, K, K), dtype=jnp.float32) * 0.1

    # Deterministic BatchNorm2d parameters / running stats (eval-mode BN).
    gamma = 1.0 + 0.1 * jax.random.normal(k_g, (C2,), dtype=jnp.float32)
    beta = 0.1 * jax.random.normal(k_b, (C2,), dtype=jnp.float32)
    running_mean = 0.1 * jax.random.normal(k_m, (C2,), dtype=jnp.float32)
    running_var = 1.0 + 0.1 * jax.random.uniform(k_v, (C2,), dtype=jnp.float32)

    out = conv_bn_silu(x, weight, gamma, beta, running_mean, running_var, k=K)
    out = jax.block_until_ready(out)

    ref = _reference(x, weight, gamma, beta, running_mean, running_var, k=K)
    # Tolerance loosened vs v1: weights (and the in-register x slices) are bf16 on the
    # MXU now; accumulation and epilogue remain f32.
    np.testing.assert_allclose(np.asarray(out), np.asarray(ref), rtol=3e-2, atol=3e-2)

    print("KERNEL_OK")
</pallas_src>

<mosaic_0001>
module attributes {stable_mosaic.version = 11 : i64} {
  func.func @_conv_bn_silu_kernel(%arg0: i32, %arg1: memref<56x128xf32, #tpu.memory_space<vmem>>, %arg2: memref<3x128x128xbf16, #tpu.memory_space<vmem>>, %arg3: memref<1x128xf32, #tpu.memory_space<vmem>>, %arg4: memref<24x128xf32, #tpu.memory_space<vmem>>) attributes {dimension_semantics = [#tpu.dimension_semantics<parallel>], iteration_bounds = array<i64: 2>, scalar_prefetch = 0 : i64, scratch_operands = 0 : i64, tpu.core_type = #tpu.core_type<tc>, window_params = [{pipeline_mode = #tpu.pipeline_mode<synchronous>, transform_indices = @transform_0, window_bounds = array<i64: 56, 128>}, {pipeline_mode = #tpu.pipeline_mode<synchronous>, transform_indices = @transform_1, window_bounds = array<i64: 3, 128, 128>}, {pipeline_mode = #tpu.pipeline_mode<synchronous>, transform_indices = @transform_2, window_bounds = array<i64: 1, 128>}, {transform_indices = @transform_3, window_bounds = array<i64: 24, 128>}]} {
    %c24_i32 = arith.constant 24 : i32
    %0 = arith.muli %arg0, %c24_i32 : i32
    %1 = tpu.assume_multiple %0, 8 : i32
    %2 = arith.index_cast %1 : i32 to index
    %c0 = arith.constant 0 : index
    %3 = vector.load %arg1[%2, %c0] : memref<56x128xf32, #tpu.memory_space<vmem>>, vector<24x128xf32>
    %4 = arith.truncf %3 : vector<24x128xf32> to vector<24x128xbf16>
    %c0_0 = arith.constant 0 : index
    %c0_1 = arith.constant 0 : index
    %c0_2 = arith.constant 0 : index
    %5 = vector.load %arg2[%c0_0, %c0_1, %c0_2] : memref<3x128x128xbf16, #tpu.memory_space<vmem>>, vector<1x128x128xbf16>
    %6 = vector.shape_cast %5 : vector<1x128x128xbf16> to vector<128x128xbf16>
    %cst = arith.constant dense<0.000000e+00> : vector<24x128xf32>
    %7 = tpu.matmul %4, %6, %cst {dimension_numbers = #tpu.dot_dimension_numbers<[1], [0], [0], [1], [0, 0, 1, 1], [], []>} : vector<24x128xbf16>, vector<128x128xbf16>, vector<24x128xf32> -> vector<24x128xf32>
    %c1_i32 = arith.constant 1 : i32
    %8 = arith.addi %1, %c1_i32 : i32
    %9 = arith.index_cast %8 : i32 to index
    %c0_3 = arith.constant 0 : index
    %10 = vector.load %arg1[%9, %c0_3] : memref<56x128xf32, #tpu.memory_space<vmem>>, vector<24x128xf32>
    %11 = arith.truncf %10 : vector<24x128xf32> to vector<24x128xbf16>
    %c1 = arith.constant 1 : index
    %c0_4 = arith.constant 0 : index
    %c0_5 = arith.constant 0 : index
    %12 = vector.load %arg2[%c1, %c0_4, %c0_5] : memref<3x128x128xbf16, #tpu.memory_space<vmem>>, vector<1x128x128xbf16>
    %13 = vector.shape_cast %12 : vector<1x128x128xbf16> to vector<128x128xbf16>
    %cst_6 = arith.constant dense<0.000000e+00> : vector<24x128xf32>
    %14 = tpu.matmul %11, %13, %cst_6 {dimension_numbers = #tpu.dot_dimension_numbers<[1], [0], [0], [1], [0, 0, 1, 1], [], []>} : vector<24x128xbf16>, vector<128x128xbf16>, vector<24x128xf32> -> vector<24x128xf32>
    %15 = arith.addf %7, %14 : vector<24x128xf32>
    %c2_i32 = arith.constant 2 : i32
    %16 = arith.addi %1, %c2_i32 : i32
    %17 = arith.index_cast %16 : i32 to index
    %c0_7 = arith.constant 0 : index
    %18 = vector.load %arg1[%17, %c0_7] : memref<56x128xf32, #tpu.memory_space<vmem>>, vector<24x128xf32>
    %19 = arith.truncf %18 : vector<24x128xf32> to vector<24x128xbf16>
    %c2 = arith.constant 2 : index
    %c0_8 = arith.constant 0 : index
    %c0_9 = arith.constant 0 : index
    %20 = vector.load %arg2[%c2, %c0_8, %c0_9] : memref<3x128x128xbf16, #tpu.memory_space<vmem>>, vector<1x128x128xbf16>
    %21 = vector.shape_cast %20 : vector<1x128x128xbf16> to vector<128x128xbf16>
    %cst_10 = arith.constant dense<0.000000e+00> : vector<24x128xf32>
    %22 = tpu.matmul %19, %21, %cst_10 {dimension_numbers = #tpu.dot_dimension_numbers<[1], [0], [0], [1], [0, 0, 1, 1], [], []>} : vector<24x128xbf16>, vector<128x128xbf16>, vector<24x128xf32> -> vector<24x128xf32>
    %23 = arith.addf %15, %22 : vector<24x128xf32>
    %c0_11 = arith.constant 0 : index
    %c0_12 = arith.constant 0 : index
    %24 = vector.load %arg3[%c0_11, %c0_12] : memref<1x128xf32, #tpu.memory_space<vmem>>, vector<1x128xf32>
    %25 = vector.broadcast %24 : vector<1x128xf32> to vector<24x128xf32>
    %26 = arith.addf %23, %25 : vector<24x128xf32>
    %27 = arith.negf %26 : vector<24x128xf32>
    %28 = math.exp %27 : vector<24x128xf32>
    %cst_13 = arith.constant 1.000000e+00 : f32
    %29 = vector.broadcast %cst_13 : f32 to vector<24x128xf32>
    %30 = arith.addf %29, %28 : vector<24x128xf32>
    %31 = arith.divf %29, %30 : vector<24x128xf32>
    %32 = arith.mulf %26, %31 : vector<24x128xf32>
    %c0_14 = arith.constant 0 : index
    %c0_15 = arith.constant 0 : index
    %33 = vector.load %arg4[%c0_14, %c0_15] : memref<24x128xf32, #tpu.memory_space<vmem>>, vector<24x128xf32>
    tpu.vector_store %arg4[%c0_14, %c0_15], %32 {strides = array<i32>} : memref<24x128xf32, #tpu.memory_space<vmem>>, vector<24x128xf32>,
    return
  }
  func.func @transform_0(%arg0: i32) -> (i32, i32) {
    %c0_i32 = arith.constant 0 : i32
    %c0_i32_0 = arith.constant 0 : i32
    %c0_i32_1 = arith.constant 0 : i32
    return %c0_i32, %c0_i32_0 : i32, i32
  }
  func.func @transform_1(%arg0: i32) -> (i32, i32, i32) {
    %c0_i32 = arith.constant 0 : i32
    %c0_i32_0 = arith.constant 0 : i32
    %c0_i32_1 = arith.constant 0 : i32
    %c0_i32_2 = arith.constant 0 : i32
    return %c0_i32, %c0_i32_0, %c0_i32_1 : i32, i32, i32
  }
  func.func @transform_2(%arg0: i32) -> (i32, i32) {
    %c0_i32 = arith.constant 0 : i32
    %c0_i32_0 = arith.constant 0 : i32
    %c0_i32_1 = arith.constant 0 : i32
    return %c0_i32, %c0_i32_0 : i32, i32
  }
  func.func @transform_3(%arg0: i32) -> (i32, i32) {
    %c0_i32 = arith.constant 0 : i32
    %c0_i32_0 = arith.constant 0 : i32
    return %arg0, %c0_i32 : i32, i32
  }
}

</mosaic_0001>

<bundles_post_ra>
// kernel: tpu_custom_call.1
= control target key start
LH: loop header
LB: loop body
LE: loop exit
PB: predicated region body
PF: predicated region fallthrough
CT: control target
= control target key end

     0   :  { %8 = vsyncpa [#allocation3], 0  ;;  %s1251_s0 = inlined_call_operand.hbm [shape: f32[56,128], index: 0, kind: input, shape index: {}]   ;;  %s1252_s1 = inlined_call_operand.hbm [shape: bf16[3,128,128], index: 1, kind: input, shape index: {}]   ;;  %s1253_s2 = inlined_call_operand.vmem [shape: f32[1,128], index: 2, kind: input, shape index: {}]   ;;  %s1254_s3 = inlined_call_operand.hbm [shape: f32[48,128], index: 3, kind: output, shape index: {}]  }
   0x1   :  { %9 = vsyncpa [#allocation6], 0 }
   0x2   :  { %10 = vsyncpa [#allocation4], 0 }
   0x3   :  { %12 = vsyncpa [#allocation4 + $0x1], 0  ;;  %s1066_s12 = smov 0   ;;  %s1068_s13 = smov 0  }
   0x4   :  { %s1070_s14 = smov 0   ;;  %s1072_s15 = smov 0  }
   0x5 LB: > { %s1087_s16 = sadd.s32 4294967295, %s1035_s15   ;;  %s671_s17 = sadd.s32 4294967294, %s1035_s15   ;;  %s1035_s15 = sphi %s1072_s15, %s1272_s15   ;;  %s1031_s14 = sphi %s1070_s14, %s1271_s14   ;;  %s1027_s13 = sphi %s1068_s13, %s1270_s13   ;;  %s1023_s12 = sphi %s1066_s12, %s1269_s12  }
   0x6   : > { %s1091_s18 = sadd.s32 1, %s1035_s15   ;;  %s88_s19 = sadd.s32 1, %s1031_s14 }
   0x7   : > { %s85_s20 = ssub.s32 %s1035_s15, %s1091_s18  ;;  %p98_p0 = scmp.ne.s32.totalorder %s1031_s14, %s1027_s13 }
   0x8   : > { %p86_p1 = scmp.eq.s32.totalorder %s85_s20, 0  ;;  %p99_p2 = scmp.eq.s32.totalorder %s1087_s16, 1 }
   0x9   : > { %p104_p3 = scmp.ne.s32.totalorder %s1027_s13, %s1023_s12  ;;  %p105_p4 = scmp.eq.s32.totalorder %s671_s17, 1 }
   0xa   : > { %s1102_s21 = scalar_select %p86_p1, %s1031_s14, %s88_s19  }
   0xb   : > { %p1104_p5 = por %p99_p2, %p98_p0  ;;  %p1108_p6 = por %p105_p4, %p104_p3 }
   0xc   : > { %p672_p7 = scmp.ge.s32.totalorder %s1035_s15, 1  ;;  %p112_p8 = scmp.lt.s32.totalorder %s1035_s15, 3 }
   0xd   : > { %s1258_s22 = scalar_select %p1104_p5, 1, 0 }
   0xe   : > { %s1259_s23 = scalar_select %p1108_p6, 1, 0 }
   0xf   : > { %p1255_p9 = scmp.eq.s32.totalorder %s1087_s16, 0  ;;  %p1115_p10 = pnand %p672_p7, %p112_p8 }
  0x10   : > { %s1037_s25 = smov [#allocation2]   ;;  %s1038_s28 = smov [#allocation5]  }
  0x11   : > { %s1260_s24 = scalar_select %p1115_p10, 1, 0 }
  0x12   : > { %s124_s26 = sshll.u32 %s1037_s25, 4  ;;  %p817_p11 = pneg %p1115_p10  ;;  %s125_s26 = int_to_ptr.vmem [resolvable:$true] %s124_s26 }
  0x13   : > { %s137_s29 = sshll.u32 %s1038_s28, 4  ;;  %s909_s5 = scalar_lea.hbm %s1251_s0, 896  ;;  %s1127_s29 = int_to_ptr.vmem [resolvable:$true] %s137_s29 }
  0x14   : > { %p1123_p12 = pnand %p1255_p9, %p817_p11  ;;  %p910_p13 = scmp.ne.s32.totalorder %s1251_s0, %s909_s5 }
  0x15   : > { %p916_p3 = scmp.lt.u32.totalorder %s909_s5, %s1251_s0 }
  0x16   : > { %p911_p0 = pneg %p1123_p12 }
  0x18   : > { %p912_p1 = pnand %p911_p0, %p910_p13 }
  0x1a   : > { %p913_p2 = pneg %p912_p1 }
  0x1c   : > { %p918_p4 = pnand %p916_p3, %p913_p2 }
  0x1e   : > { %921 = shalt.err (!%p918_p4)
}
  0x1f   : > { %s922_s10 = scalar_lea.vmem %s125_s26, 896  ;;  %p930_p9 = scmp.lt.s32.totalorder %s125_s26, %s125_s26 }
  0x20   : > { %p923_p7 = scmp.ne.s32.totalorder %s125_s26, %s922_s10  ;;  %p931_p6 = scmp.lt.s32.totalorder %s922_s10, %s922_s10 }
  0x22   : > { %p925_p8 = pnand %p923_p7, %p911_p0  ;;  %p932_p5 = por %p931_p6, %p930_p9 }
  0x24   : > { %p926_p11 = pneg %p925_p8 }
  0x26   : > { %p933_p10 = pnand %p932_p5, %p926_p11 }
  0x28   : > { %936 = shalt.err (!%p933_p10)
}
  0x29   : > { %s1039_s11 = smov 128   ;;  %s1040_s17 = smov 8  }
  0x2a   : > { %820 = dma.hbm_to_vmem [thread:$0]  (!%p1123_p12), %s1251_s0, 896, %s125_s26, [#allocation3], %s1039_s11, %s1039_s11, %s1040_s17  }
  0x2b   : > { %s937_s30 = scalar_lea.hbm %s1252_s1, 3072 }
  0x2c   : > { %p938_p13 = scmp.ne.s32.totalorder %s1252_s1, %s937_s30  ;;  %p944_p9 = scmp.lt.u32.totalorder %s937_s30, %s1252_s1 }
  0x2e   : > { %p940_p5 = pnand %p938_p13, %p911_p0 }
  0x30   : > { %p941_p6 = pneg %p940_p5 }
  0x32   : > { %p946_p10 = pnand %p944_p9, %p941_p6 }
  0x34   : > { %949 = shalt.err (!%p946_p10)
}
  0x35   : > { %s950_s26 = scalar_lea.vmem %s1127_s29, 3072  ;;  %p958_p4 = scmp.lt.s32.totalorder %s1127_s29, %s1127_s29 }
  0x36   : > { %p951_p1 = scmp.ne.s32.totalorder %s1127_s29, %s950_s26  ;;  %p959_p7 = scmp.lt.s32.totalorder %s950_s26, %s950_s26 }
  0x38   : > { %p953_p2 = pnand %p951_p1, %p911_p0  ;;  %p960_p8 = por %p959_p7, %p958_p4 }
  0x3a   : > { %p954_p3 = pneg %p953_p2 }
  0x3c   : > { %p961_p11 = pnand %p960_p8, %p954_p3 }
  0x3e   : > { %964 = shalt.err (!%p961_p11)
}
  0x3f   : > { %s1041_s8 = smov 64   ;;  %s1042_s9 = smov 4  }
  0x40   : > { %823 = dma.hbm_to_vmem [thread:$0]  (!%p1123_p12), %s1252_s1, 3072, %s1127_s29, [#allocation6], %s1041_s8, %s1041_s8, %s1042_s9  }
  0x41   : > { %p1262_p13 = scmp.ne.s32.totalorder %s1260_s24, 0 }
  0x42   : > { %p1263_p0 = scmp.eq.s32.totalorder (!%p1262_p13), %s1087_s16, 0 }
  0x43   : > { %156 = sbr.rel (%p1262_p13) target bundleno = 405 (0x195), region = 32 }
  0x4a   : > { %1010 = dma.done.wait (%p1263_p0), [#allocation3], 896   ;;  %p1264_p5 = pmov %p1263_p0 }
  0x4b   : > { %p1265_p6 = pmov %p1263_p0 }
  0x4c   : > { %1012 = vsyncadd (%p1264_p5), [#allocation3], 4294966400 }
  0x4d   : > { %1014 = dma.done.wait (%p1265_p6), [#allocation6], 3072   ;;  %p1266_p9 = pmov %p1263_p0 }
  0x4e   : > { %v873_v0 = vld [vmem:[#allocation5 + $0x40] sm:$0xff]   ;;  %v875_v2 = vld [vmem:[#allocation5 + $0x48] sm:$0xff]   ;;  %v877_v4 = vld [vmem:[#allocation5 + $0x50] sm:$0xff]   ;;  %s181_s24 = smul.u32 24, %s1087_s16  ;;  %s176_s19 = sand.u32 1, %s1027_s13  }
  0x4f   : > { %1016 = vsyncadd (%p1266_p9), [#allocation6], 4294964224  ;;  %v874_v1 = vld [vmem:[#allocation5] sm:$0xff]   ;;  %746 = vmatprep.subr.bf16.mxu0 %v873_v0  ;;  %v876_v3 = vld [vmem:[#allocation5 + $0x8] sm:$0xff]   ;;  %s806_s20 = smul.u32 24, %s176_s19  ;;  %s1210_s7 = scalar_lea.sflag [#allocation4], %s176_s19 }
  0x50   : > { %766 = vmatprep.subr.bf16.mxu1 %v874_v1  ;;  %747 = vmatpush3.bf16.msra.mxu0 %v873_v0  ;;  %v878_v5 = vld [vmem:[#allocation5 + $0x10] sm:$0xff]   ;;  %v879_v6 = vld [vmem:[#allocation5 + $0x58] sm:$0xff]   ;;  %v881_v8 = vld [vmem:[#allocation5 + $0x60] sm:$0xff]   ;;  %s1187_s27 = scalar_lea.vmem [#allocation2], %s181_s24  ;;  %s715_s30 = smul.u32 384, %s1087_s16 }
  0x51   : > { %767 = vmatpush3.bf16.msra.mxu1 %v874_v1  ;;  %748 = vmatprep.subr.bf16.mxu0 %v875_v2  ;;  %v880_v7 = vld [vmem:[#allocation5 + $0x18] sm:$0xff]   ;;  %v882_v9 = vld [vmem:[#allocation5 + $0x20] sm:$0xff]   ;;  %v883_v10 = vld [vmem:[#allocation5 + $0x68] sm:$0xff]   ;;  %s178_s25 = scalar_lea.vmem [#allocation7], %s806_s20  ;;  %p1267_p10 = scmp.ne.s32.totalorder %s1258_s22, 0 }
  0x52   : > { %768 = vmatprep.subr.bf16.mxu1 %v876_v3  ;;  %v678_v11 = vld [vmem:[%s1187_s27 + $0x1] sm:$0xff]  ;;  %v679_v12 = vld [vmem:[%s1187_s27 + $0x9] sm:$0xff]  ;;  %v680_v22 = vld [vmem:[%s1187_s27 + $0x11] sm:$0xff]  ;;  %s591_s28 = sshll.u32 %s178_s25, 4  ;;  %s1208_s6 = scalar_lea.hbm %s1254_s3, %s715_s30  ;;  %s1203_s28 = int_to_ptr.vmem [resolvable:$true] %s591_s28 }
  0x53   : > { %v183_v13 = vld [vmem:[%s1187_s27] sm:$0xff]  ;;  %v209_v15 = vpack.c.bf16 %v679_v12, %v678_v11  ;;  %v184_v16 = vld [vmem:[%s1187_s27 + $0x8] sm:$0xff]  ;;  %v887_v20 = vld [vmem:[#allocation5 + $0x78] sm:$0xff]   ;;  %v210_v27 = vpack.c.bf16 %v680_v22, %v680_v22  ;;  %s965_s16 = scalar_lea.vmem %s1203_s28, 384  ;;  %s1043_s26 = smov [#allocation7]  }
  0x54   : > { %749 = vmatpush3.bf16.msra.mxu0 %v875_v2  ;;  %v884_v14 = vld [vmem:[#allocation5 + $0x28] sm:$0xff]   ;;  %v186_v17 = vpack.c.bf16 %v184_v16, %v183_v13  ;;  %v885_v18 = vld [vmem:[#allocation5 + $0x70] sm:$0xff]   ;;  %v888_v21 = vld [vmem:[#allocation5 + $0x38] sm:$0xff]   ;;  %p966_p12 = scmp.ne.s32.totalorder %s1203_s28, %s965_s16  ;;  %s969_s8 = sshll.u32 %s1043_s26, 4  ;;  %s970_s8 = int_to_ptr.vmem [resolvable:$false] %s969_s8 }
  0x55   : > { %769 = vmatpush3.bf16.msra.mxu1 %v876_v3  ;;  %750 = vmatprep.subr.bf16.mxu0 %v877_v4  ;;  %v886_v19 = vld [vmem:[#allocation5 + $0x30] sm:$0xff]   ;;  %v185_v23 = vld [vmem:[%s1187_s27 + $0x10] sm:$0xff]  ;;  %v889_v24 = vld [vmem:[#allocation5 + $0x80] sm:$0xff]   ;;  %s971_s9 = scalar_lea.vmem %s970_s8, 768  ;;  %p972_p3 = scmp.lt.s32.totalorder %s1203_s28, %s970_s8 }
  0x56   : > { %770 = vmatprep.subr.bf16.mxu1 %v878_v5  ;;  %762 = vmatprep.mubr.bf16.mxu0 %v209_v15  ;;  %v697_v25 = vld [vmem:[%s1187_s27 + $0x2] sm:$0xff]  ;;  %v698_v26 = vld [vmem:[%s1187_s27 + $0xa] sm:$0xff]  ;;  %v187_v28 = vpack.c.bf16 %v185_v23, %v185_v23  ;;  %v893_v33 = vld [vmem:[#allocation5 + $0xa0] sm:$0xff]   ;;  %p967_p1 = pnand %p966_p12, %p1267_p10  ;;  %p973_p4 = scmp.lt.s32.totalorder %s971_s9, %s965_s16 }
  0x57   : > { %782 = vmatprep.mubr.bf16.mxu1 %v186_v17  ;;  %v890_v29 = vld [vmem:[#allocation5 + $0x88] sm:$0xff]   ;;  %v425_v30 = vpack.c.bf16 %v698_v26, %v697_v25  ;;  %v891_v31 = vld [vmem:[#allocation5 + $0x90] sm:$0xff]   ;;  %v892_v32 = vld [vmem:[#allocation5 + $0x98] sm:$0xff]  }
  0x58   : > { %751 = vmatpush3.bf16.msra.mxu0 %v877_v4  ;;  %v894_v34 = vld [vmem:[#allocation5 + $0xa8] sm:$0xff]   ;;  %v895_v35 = vld [vmem:[#allocation5 + $0xb0] sm:$0xff]   ;;  %v896_v36 = vld [vmem:[#allocation5 + $0xb8] sm:$0xff]   ;;  %p968_p2 = pneg %p967_p1  ;;  %p974_p7 = por %p973_p4, %p972_p3 }
  0x59   : > { %771 = vmatpush3.bf16.msra.mxu1 %v878_v5  ;;  %752 = vmatprep.subr.bf16.mxu0 %v879_v6  ;;  %v699_v37 = vld [vmem:[%s1187_s27 + $0x12] sm:$0xff]  ;;  %v708_v51 = vld [vmem:[%s1253_s2] ss:$0 sm:$0xff] }
  0x5a   : > { %772 = vmatprep.subr.bf16.mxu1 %v880_v7  ;;  %v426_v38 = vpack.c.bf16 %v699_v37, %v699_v37  ;;  %p975_p8 = pnand %p974_p7, %p968_p2 }
  0x5c   : > { %753 = vmatpush3.bf16.msra.mxu0 %v879_v6 }
  0x5d   : > { %773 = vmatpush3.bf16.msra.mxu1 %v880_v7  ;;  %754 = vmatprep.subr.bf16.mxu0 %v881_v8 }
  0x5e   : > { %774 = vmatprep.subr.bf16.mxu1 %v882_v9 }
  0x60   : > { %755 = vmatpush3.bf16.msra.mxu0 %v881_v8 }
  0x61   : > { %775 = vmatpush3.bf16.msra.mxu1 %v882_v9  ;;  %756 = vmatprep.subr.bf16.mxu0 %v883_v10 }
  0x62   : > { %776 = vmatprep.subr.bf16.mxu1 %v884_v14 }
  0x64   : > { %757 = vmatpush3.bf16.msra.mxu0 %v883_v10 }
  0x65   : > { %777 = vmatpush3.bf16.msra.mxu1 %v884_v14  ;;  %758 = vmatprep.subr.bf16.mxu0 %v885_v18 }
  0x66   : > { %778 = vmatprep.subr.bf16.mxu1 %v886_v19 }
  0x68   : > { %759 = vmatpush3.bf16.msra.mxu0 %v885_v18 }
  0x69   : > { %779 = vmatpush3.bf16.msra.mxu1 %v886_v19  ;;  %760 = vmatprep.subr.bf16.mxu0 %v887_v20 }
  0x6a   : > { %780 = vmatprep.subr.bf16.mxu1 %v888_v21 }
  0x6c   : > { %761 = vmatpush3.bf16.msra.mxu0 %v887_v20 }
  0x6d   : > { %781 = vmatpush3.bf16.msra.mxu1 %v888_v21  ;;  %786 = vmatprep.subr.bf16.mxu0 %v889_v24 }
  0x6f   : > { %763 = vmatmul.mubr.bf16.vlgmr.msra.gmra.mrb[0].mxu0 %v210_v27 }
  0x70   : > { %783 = vmatmul.mubr.bf16.vlgmr.msra.gmra.mrb[0].mxu1 %v187_v28  ;;  %787 = vmatpush3.bf16.msra.mxu0 %v889_v24 }
  0x71   : > { %788 = vmatprep.subr.bf16.mxu0 %v890_v29  ;;  %802 = vmatprep.mubr.bf16.mxu0 %v425_v30 }
  0x74   : > { %789 = vmatpush3.bf16.msra.mxu0 %v890_v29 }
  0x75   : > { %790 = vmatprep.subr.bf16.mxu0 %v891_v31 }
  0x78   : > { %791 = vmatpush3.bf16.msra.mxu0 %v891_v31 }
  0x79   : > { %792 = vmatprep.subr.bf16.mxu0 %v892_v32 }
  0x7c   : > { %793 = vmatpush3.bf16.msra.mxu0 %v892_v32 }
  0x7d   : > { %794 = vmatprep.subr.bf16.mxu0 %v893_v33 }
  0x80   : > { %795 = vmatpush3.bf16.msra.mxu0 %v893_v33 }
  0x81   : > { %796 = vmatprep.subr.bf16.mxu0 %v894_v34 }
  0x84   : > { %797 = vmatpush3.bf16.msra.mxu0 %v894_v34 }
  0x85   : > { %798 = vmatprep.subr.bf16.mxu0 %v895_v35 }
  0x88   : > { %799 = vmatpush3.bf16.msra.mxu0 %v895_v35 }
  0x89   : > { %800 = vmatprep.subr.bf16.mxu0 %v896_v36 }
  0x8c   : > { %801 = vmatpush3.bf16.msra.mxu0 %v896_v36 }
  0x8f   : > { %803 = vmatmul.mubr.bf16.vlgmr.msra.gmra.mrb[4].mxu0 %v426_v38 }
 0x142   : > { %v764_v39 = vpop.f32.mrb[0].mxu0 }
 0x143   : > { %v784_v40 = vpop.f32.mrb[0].mxu1  ;;  %v310_v41 = vpop.f32.mrb[1].mxu0 }
 0x144   : > { %v415_v42 = vadd.f32 %v784_v40, %v764_v39  ;;  %v406_v43 = vpop.f32.mrb[1].mxu1  ;;  %v765_v44 = vpop.f32.mrb[2].mxu0 }
 0x145   : > { %v407_v45 = vadd.f32 %v406_v43, %v310_v41  ;;  %v785_v46 = vpop.f32.mrb[2].mxu1  ;;  %v313_v47 = vpop.f32.mrb[3].mxu0 }
 0x146   : > { %v409_v48 = vpop.f32.mrb[3].mxu1 }
 0x147   : > { %v410_v49 = vadd.f32 %v409_v48, %v313_v47 }
 0x162   : > { %v804_v50 = vpop.f32.mrb[4].mxu0 }
 0x163   : > { %v542_v52 = vadd.f32 %v804_v50, %v415_v42  ;;  %v526_v53 = vpop.f32.mrb[5].mxu0 }
 0x164   : > { %v540_v54 = vadd.f32 %v526_v53, %v407_v45  ;;  %v805_v55 = vpop.f32.mrb[6].mxu0 }
 0x165   : > { %v552_v56 = vadd.f32 %v708_v51, %v542_v52  ;;  %v529_v57 = vpop.f32.mrb[7].mxu0 }
 0x166   : > { %v550_v58 = vadd.f32 %v708_v51, %v540_v54  ;;  %v541_v59 = vadd.f32 %v529_v57, %v410_v49 }
 0x167   : > { %v711_v60 = vmul.f32 -1.442695, %v552_v56 }
 0x168   : > { %v709_v61 = vmul.f32 -1.442695, %v550_v58  ;;  %v551_v62 = vadd.f32 %v708_v51, %v541_v59 }
 0x169   : > { %897 = vpow2.f32 %v711_v60 }
 0x16a   : > { %899 = vpow2.f32 %v709_v61  ;;  %v710_v63 = vmul.f32 -1.442695, %v551_v62 }
 0x16c   : > { %901 = vpow2.f32 %v710_v63 }
 0x173   : > { %v898_v0 = vpop.eup %897 }
 0x174   : > { %v900_v1 = vpop.eup %899  ;;  %v564_v2 = vadd.f32 1.0, %v898_v0 }
 0x175   : > { %v562_v3 = vadd.f32 1.0, %v900_v1 }
 0x176   : > { %v902_v4 = vpop.eup %901  ;;  %903 = vrcp.f32 %v564_v2 }
 0x177   : > { %905 = vrcp.f32 %v562_v3  ;;  %v563_v5 = vadd.f32 1.0, %v902_v4 }
 0x179   : > { %907 = vrcp.f32 %v563_v5 }
 0x180   : > { %v904_v6 = vpop.eup %903 }
 0x181   : > { %v906_v7 = vpop.eup %905  ;;  %v573_v8 = vmul.f32 %v904_v6, %v552_v56 }
 0x182   : > { %v571_v9 = vmul.f32 %v906_v7, %v550_v58 }
 0x183   : > { %v908_v10 = vpop.eup %907  ;;  %576 = vst [vmem:[%s178_s25 + $0x10] sm:$0xff] %v573_v8 }
 0x184   : > { %574 = vst [vmem:[%s178_s25] sm:$0xff] %v571_v9  ;;  %v572_v11 = vmul.f32 %v908_v10, %v551_v62 }
 0x186   : > { %575 = vst [vmem:[%s178_s25 + $0x8] sm:$0xff] %v572_v11 }
 0x187   : > { %978 = shalt.err (!%p975_p8)
}
 0x188   : > { %s979_s10 = scalar_lea.hbm %s1208_s6, 384  ;;  %s983_s27 = scalar_lea.hbm %s1254_s3, 768 }
 0x189   : > { %p980_p11 = scmp.ne.s32.totalorder %s1208_s6, %s979_s10  ;;  %p984_p5 = scmp.lt.u32.totalorder %s1208_s6, %s1254_s3 }
 0x18a   : > { %p985_p6 = scmp.lt.u32.totalorder %s983_s27, %s979_s10  ;;  %p987_p12 = scmp.lt.u32.totalorder %s979_s10, %s1208_s6 }
 0x18b   : > { %p981_p13 = pnand %p980_p11, %p1267_p10 }
 0x18c   : > { %p986_p9 = por %p985_p6, %p984_p5 }
 0x18d   : > { %p982_p0 = pneg %p981_p13 }
 0x18e   : > { %p988_p1 = por %p987_p12, %p986_p9 }
 0x190   : > { %p989_p2 = pnand %p988_p1, %p982_p0 }
 0x192   : > { %992 = shalt.err (!%p989_p2)
}
 0x193   : > { %s1044_s19 = smov 128   ;;  %s1045_s20 = smov 8  }
 0x194   : > { %815 = dma.vmem_to_hbm [thread:$0]  (%p1267_p10), %s1203_s28, 384, %s1208_s6, %s1210_s7, %s1044_s19, %s1044_s19, %s1045_s20  }
 0x195 PF: > { %p832_p3 = scmp.ge.s32.totalorder %s1035_s15, 2  ;;  %s606_s25 = sand.u32 1, %s1023_s12  }
 0x196   : > { %p1268_p4 = scmp.ne.s32.totalorder %s1259_s23, 0  ;;  %s607_s30 = scalar_lea.sflag [#allocation4], %s606_s25 }
 0x198   : > { %p825_p7 = pnand %p832_p3, %p1268_p4 }
 0x19a   : > { %1018 = dma.done.wait (!%p825_p7), %s607_s30, 384  }
 0x19b   : > { %1020 = vsyncadd (!%p825_p7), %s607_s30, 4294966912  ;;  %p15_p8 = scmp.ge.s32.totalorder %s1091_s18, 4   ;;  %s1269_s12 = smov %s1027_s13 }
 0x19c   : > { %s1270_s13 = smov %s1031_s14  ;;  %s1271_s14 = smov %s1102_s21 }
 0x19d   : > { %s1272_s15 = smov %s1091_s18  ;;  %17 = sbr.rel (!%p15_p8) target bundleno = 5 (0x5), region = 78 }
 0x1a4   :  { %612 = vsyncpa [#allocation3], 1 }
 0x1a5   :  { %614 = vsyncpa [#allocation3 + $0x1], 1 }
 0x1a6   :  { %615 = vsyncpa [#allocation6], 1 }
 0x1a7   :  { %616 = vsyncpa [#allocation4], 1 }
 0x1a8   :  { %618 = vsyncpa [#allocation4 + $0x1], 1 }

</bundles_post_ra>
